<compile_context>
chip_gen: v6e
topology: v6e:2x2x1
jax: 0.10.0
libtpu: 0.0.40
codegen_flags: <defaults>
</compile_context>

<pallas_src>
import functools

import jax
import jax.numpy as jnp
from jax import lax
from jax.experimental import pallas as pl
from jax.experimental.pallas import tpu as pltpu

_EPS = 1e-5


def _round_up(x, m):
    return ((x + m - 1) // m) * m


def _transition_kernel(x_ref, w_ref, t_ref, b_ref, p_ref,      # VMEM inputs
                       o_ref,                                   # VMEM output
                       xpad_ref, patch_ref,                     # VMEM scratch
                       *, C, C_pad, H, W, Nb, halo):
    HW = H * W
    HpWp = (H // 2) * (W // 2)
    dt = xpad_ref.dtype

    # Zero only what the per-image interior write never covers: the two halo
    # strips and (when C is padded) the padded channel rows.  Deliberately
    # unconditional: with a "parallel" batch axis a TensorCore may start at a
    # nonzero program id with uninitialized scratch.
    xpad_ref[:, pl.ds(0, halo)] = jnp.zeros((C_pad, halo), dt)
    xpad_ref[:, pl.ds(halo + HW, halo)] = jnp.zeros((C_pad, halo), dt)
    if C_pad != C:
        xpad_ref[pl.ds(C, C_pad - C), pl.ds(halo, HW)] = jnp.zeros(
            (C_pad - C, HW), dt)

    taps = t_ref[...]          # (T_pad, HW): rows 0..8 = 3x3 tap validity masks
    wmat = w_ref[...]          # (OC_pad, 9*C_pad) BN-folded conv weights
    bias = b_ref[...]          # (OC_pad, HW) f32: BN1 border shift + BN2 shift
    pmat = p_ref[...]          # (HW, HpWp) 2x2 average-pool matrix (0.25s)

    for b in range(Nb):
        # Lane-dense, 128-aligned copy of image b into the halo scratch.
        xpad_ref[pl.ds(0, C), pl.ds(halo, HW)] = x_ref[b]

        # im2col: 9 statically shifted, masked (C_pad, HW) slabs; full-sublane
        # stores (padded channel rows are zero and their weight columns are 0).
        for tap in range(9):
            oy, ox = tap // 3 - 1, tap % 3 - 1
            d = oy * W + ox                                   # flat tap offset
            shifted = xpad_ref[:, pl.ds(halo + d, HW)]        # (C_pad, HW)
            patch_ref[pl.ds(tap * C_pad, C_pad), :] = (
                shifted * taps[tap:tap + 1, :])

        # Fused BN1 -> conv3x3 -> BN2: one MXU contraction + f32 bias, ReLU.
        z = jnp.dot(wmat, patch_ref[...], preferred_element_type=jnp.float32)
        z = jnp.maximum(z + bias, 0.0)                        # (OC_pad, HW) f32

        # 2x2 average pool: one (OC_pad, HW) @ (HW, HpWp) matmul, lane-dense
        # store into the (OC_pad, Nb*HpWp) output block at lane offset b*HpWp.
        zp = jnp.dot(z.astype(pmat.dtype), pmat,
                     preferred_element_type=jnp.float32)
        o_ref[:, :, pl.ds(b * HpWp, HpWp)] = zp[None].astype(o_ref.dtype)


def transition_layer(x, conv_w, bn1, bn2, *,
                     compute_dtype=jnp.float32, batch_block=None):
    """x: (N, C, H, W) f32 NCHW.  Returns (N, OC, H//2, W//2) f32."""
    N, C, H, W = x.shape
    OC = conv_w.shape[0]
    if H % 2 or W % 2:
        raise ValueError("AvgPool2d(2,2): H and W must be even")
    Hp, Wp = H // 2, W // 2
    HW, HpWp = H * W, Hp * Wp

    f32 = jnp.float32
    cd = jnp.dtype(compute_dtype)
    bcd = cd.itemsize
    sub = 16 if bcd == 2 else 8                 # full-sublane multiple
    C_pad = _round_up(C, sub)
    OC_pad = _round_up(OC, sub)
    K_pad = 9 * C_pad
    T_pad = _round_up(9, sub)                   # padded tap-mask row count

    g1, be1, rm1, rv1 = [t.astype(f32) for t in bn1]
    g2, be2, rm2, rv2 = [t.astype(f32) for t in bn2]
    a1 = g1 / jnp.sqrt(rv1 + _EPS)
    b1 = be1 - rm1 * a1
    a2 = g2 / jnp.sqrt(rv2 + _EPS)
    b2 = be2 - rm2 * a2

    # Fold BN1 / BN2 scales into the conv weights; column index = tap*C_pad + ic
    # with tap = ky*3 + kx (matches the im2col row order inside the kernel).
    w = conv_w.astype(f32)                                          # (OC, C, 3, 3)
    w_x = a2[:, None, None, None] * w * a1[None, :, None, None]
    w_x = jnp.transpose(w_x, (0, 2, 3, 1)).reshape(OC, 9, C)
    w_x = jnp.pad(w_x, ((0, OC_pad - OC), (0, 0), (0, C_pad - C)))
    wmat = w_x.reshape(OC_pad, K_pad).astype(compute_dtype)

    # (9, HW) tap-validity masks (depend only on H, W); pad rows to T_pad.
    pos = jnp.arange(HW, dtype=jnp.int32)
    row, col = pos // W, pos % W
    t_idx = jnp.arange(9, dtype=jnp.int32)
    oy = t_idx // 3 - 1
    ox = t_idx % 3 - 1
    valid = ((row[None, :] + oy[:, None] >= 0) & (row[None, :] + oy[:, None] < H) &
             (col[None, :] + ox[:, None] >= 0) & (col[None, :] + ox[:, None] < W))
    valid_f = valid.astype(f32)                                     # (9, HW)
    taps = jnp.pad(valid_f, ((0, T_pad - 9), (0, 0))).astype(compute_dtype)

    # Constant (OC_pad, HW) f32 bias: exact BN1 shift under zero padding plus
    # BN2 shift, kept out of the matmul (fewer stores, f32 bias precision).
    w_b1 = (w * b1[None, :, None, None]).sum(axis=1).reshape(OC, 9)  # (OC, 9)
    bias = a2[:, None] * jnp.dot(w_b1, valid_f,
                                 precision=lax.Precision.HIGHEST) + b2[:, None]
    bias = jnp.pad(bias, ((0, OC_pad - OC), (0, 0)))                 # (OC_pad, HW)

    # 2x2 average pool as an (HW, HpWp) matrix with 0.25 entries.
    dst = jnp.arange(HpWp, dtype=jnp.int32)
    pmat = ((((row[:, None] // 2) == dst[None, :] // Wp) &
             ((col[:, None] // 2) == dst[None, :] % Wp)).astype(f32)
            * 0.25).astype(compute_dtype)

    # Lane-dense input (H*W on lanes); compute_dtype DMA (bf16 halves HBM bytes).
    x_flat = x.astype(compute_dtype).reshape(N, C, HW)

    halo = _round_up(W + 1, 128)                # 128-aligned halo >= W+1

    # Generation-aware VMEM budgeting (v5e/v6e: 128 MiB, v7x: 64 MiB physical).
    try:
        vmem_cap = int(getattr(pltpu.get_tpu_info(), "vmem_capacity_bytes",
                               64 << 20))
    except Exception:
        vmem_cap = 64 << 20
    vmem_limit = min(max(vmem_cap // 2, 16 << 20), 128 << 20)

    fixed = (K_pad * HW * bcd                   # per-image im2col scratch
             + C_pad * (HW + 2 * halo) * bcd    # zero-halo image scratch
             + 2 * OC_pad * K_pad * bcd         # weights (double-buffered)
             + 2 * OC_pad * HW * 4              # bias (double-buffered)
             + 2 * T_pad * HW * bcd             # tap masks
             + 2 * HW * HpWp * bcd)             # pool matrix
    per_img = (2 * C * HW * bcd                 # input block (double-buffered)
               + 2 * OC_pad * HpWp * 4)         # output block (double-buffered)
    if batch_block is None:
        budget = max(vmem_limit // 2 - fixed, per_img)
        batch_block = max(1, min(N, budget // per_img))
        # Keep >= 2 grid steps so the "parallel" batch axis can span both v7x
        # TensorCores and the input/output DMA pipeline has steps to overlap.
        while batch_block > 1 and N // batch_block < 2:
            batch_block -= 1
    while N % batch_block:
        batch_block -= 1
    Nb = batch_block

    kernel = functools.partial(_transition_kernel,
                               C=C, C_pad=C_pad, H=H, W=W, Nb=Nb, halo=halo)

    flops = 2 * N * HW * OC * 9 * C + 2 * N * OC * HW * HpWp
    bytes_accessed = int(x_flat.size * bcd + N * OC_pad * HpWp * 4
                         + wmat.size * bcd + bias.size * 4
                         + taps.size * bcd + pmat.size * bcd)

    out = pl.pallas_call(
        kernel,
        out_shape=jax.ShapeDtypeStruct((N // Nb, OC_pad, Nb * HpWp), f32),
        grid=(N // Nb,),
        in_specs=[
            pl.BlockSpec((Nb, C, HW), lambda n: (n, 0, 0)),     # images (lane-dense)
            pl.BlockSpec((OC_pad, K_pad), lambda n: (0, 0)),    # folded conv+BN weights
            pl.BlockSpec((T_pad, HW), lambda n: (0, 0)),        # tap-validity masks
            pl.BlockSpec((OC_pad, HW), lambda n: (0, 0)),       # f32 BN bias
            pl.BlockSpec((HW, HpWp), lambda n: (0, 0)),         # pool matrix
        ],
        out_specs=pl.BlockSpec((1, OC_pad, Nb * HpWp), lambda n: (n, 0, 0)),
        scratch_shapes=[
            pltpu.VMEM((C_pad, HW + 2 * halo), compute_dtype),  # zero-halo image
            pltpu.VMEM((K_pad, HW), compute_dtype),             # per-image im2col
        ],
        compiler_params=pltpu.CompilerParams(
            dimension_semantics=("parallel",),                  # batch axis -> megacore
            vmem_limit_bytes=vmem_limit,
        ),
        cost_estimate=pl.CostEstimate(flops=flops, transcendentals=0,
                                      bytes_accessed=bytes_accessed),
    )(x_flat, wmat, taps, bias, pmat)

    # Lane-dense (N//Nb, OC_pad, Nb*HpWp) -> (N, OC, Hp, Wp).
    out = out.reshape(N // Nb, OC_pad, Nb, HpWp)
    out = jnp.transpose(out, (0, 2, 1, 3)).reshape(N, OC_pad, Hp, Wp)
    return out[:, :OC]


def _reference(x, conv_w, bn1, bn2):
    g1, be1, rm1, rv1 = bn1
    y = (x - rm1[None, :, None, None]) / jnp.sqrt(rv1[None, :, None, None] + _EPS)
    y = y * g1[None, :, None, None] + be1[None, :, None, None]
    z = lax.conv_general_dilated(y, conv_w, (1, 1), ((1, 1), (1, 1)),
                                 dimension_numbers=("NCHW", "OIHW", "NCHW"),
                                 precision=lax.Precision.HIGHEST)
    g2, be2, rm2, rv2 = bn2
    z = (z - rm2[None, :, None, None]) / jnp.sqrt(rv2[None, :, None, None] + _EPS)
    z = z * g2[None, :, None, None] + be2[None, :, None, None]
    z = jnp.maximum(z, 0.0)
    N, OC, H, W = z.shape
    return z.reshape(N, OC, H // 2, 2, W // 2, 2).mean(axis=(3, 5))


if __name__ == "__main__":
    growth_k = 6
    N, C, H, W = 2, 4, 16, 16

    key = jax.random.PRNGKey(0)
    ks = jax.random.split(key, 10)
    x = jax.random.normal(ks[0], (N, C, H, W), jnp.float32)
    conv_w = 0.1 * jax.random.normal(ks[1], (growth_k, C, 3, 3), jnp.float32)
    # BN1 (in_channels): gamma, beta, running_mean, running_var
    bn1 = (jax.random.uniform(ks[2], (C,), jnp.float32, 0.5, 1.5),
           0.1 * jax.random.normal(ks[3], (C,), jnp.float32),
           0.1 * jax.random.normal(ks[4], (C,), jnp.float32),
           jax.random.uniform(ks[5], (C,), jnp.float32, 0.5, 1.5))
    # BN2 (growth_k)
    bn2 = (jax.random.uniform(ks[6], (growth_k,), jnp.float32, 0.5, 1.5),
           0.1 * jax.random.normal(ks[7], (growth_k,), jnp.float32),
           0.1 * jax.random.normal(ks[8], (growth_k,), jnp.float32),
           jax.random.uniform(ks[9], (growth_k,), jnp.float32, 0.5, 1.5))

    ref = jax.block_until_ready(_reference(x, conv_w, bn1, bn2))

    # f32 MXU path.
    out = jax.block_until_ready(transition_layer(x, conv_w, bn1, bn2))
    assert out.shape == (N, growth_k, H // 2, W // 2), out.shape
    assert jnp.allclose(out, ref, rtol=5e-3, atol=5e-3), \
        float(jnp.max(jnp.abs(out - ref)))

    # bf16 MXU path (recommended on v6e/v7x; f32 accumulation + f32 bias),
    # loose check.  TODO(synk): on v5e (no bf16 VPU) keep the tap-mask multiply
    # in f32 and cast only on the patch store.
    out_bf16 = jax.block_until_ready(
        transition_layer(x, conv_w, bn1, bn2, compute_dtype=jnp.bfloat16))
    assert jnp.allclose(out_bf16, ref, rtol=5e-2, atol=5e-2), \
        float(jnp.max(jnp.abs(out_bf16 - ref)))

    # TODO(synk): BatchNorm is inference mode (running stats folded); PyTorch
    # training-mode batch statistics would need a cross-batch two-pass reduction.
    print("KERNEL_OK")
</pallas_src>

<mosaic_0001>
module attributes {stable_mosaic.version = 11 : i64} {
  func.func @_transition_kernel(%arg0: i32, %arg1: memref<1x4x256xf32, #tpu.memory_space<vmem>>, %arg2: memref<8x72xf32, #tpu.memory_space<vmem>>, %arg3: memref<16x256xf32, #tpu.memory_space<vmem>>, %arg4: memref<8x256xf32, #tpu.memory_space<vmem>>, %arg5: memref<256x64xf32, #tpu.memory_space<vmem>>, %arg6: memref<1x8x64xf32, #tpu.memory_space<vmem>>, %arg7: memref<8x512xf32, #tpu.memory_space<vmem>>, %arg8: memref<72x256xf32, #tpu.memory_space<vmem>>) attributes {dimension_semantics = [#tpu.dimension_semantics<parallel>], iteration_bounds = array<i64: 2>, scalar_prefetch = 0 : i64, scratch_operands = 2 : i64, tpu.core_type = #tpu.core_type<tc>, window_params = [{transform_indices = @transform_0, window_bounds = array<i64: 1, 4, 256>}, {pipeline_mode = #tpu.pipeline_mode<synchronous>, transform_indices = @transform_1, window_bounds = array<i64: 8, 72>}, {pipeline_mode = #tpu.pipeline_mode<synchronous>, transform_indices = @transform_2, window_bounds = array<i64: 16, 256>}, {pipeline_mode = #tpu.pipeline_mode<synchronous>, transform_indices = @transform_3, window_bounds = array<i64: 8, 256>}, {pipeline_mode = #tpu.pipeline_mode<synchronous>, transform_indices = @transform_4, window_bounds = array<i64: 256, 64>}, {transform_indices = @transform_5, window_bounds = array<i64: 1, 8, 64>}]} {
    %cst = arith.constant 0.000000e+00 : f32
    %0 = vector.broadcast %cst : f32 to vector<8x128xf32>
    %c0 = arith.constant 0 : index
    %c0_0 = arith.constant 0 : index
    %1 = vector.load %arg7[%c0, %c0_0] : memref<8x512xf32, #tpu.memory_space<vmem>>, vector<8x128xf32>
    tpu.vector_store %arg7[%c0, %c0_0], %0 {strides = array<i32>} : memref<8x512xf32, #tpu.memory_space<vmem>>, vector<8x128xf32>,
    %cst_1 = arith.constant 0.000000e+00 : f32
    %2 = vector.broadcast %cst_1 : f32 to vector<8x128xf32>
    %c0_2 = arith.constant 0 : index
    %c384 = arith.constant 384 : index
    %3 = vector.load %arg7[%c0_2, %c384] : memref<8x512xf32, #tpu.memory_space<vmem>>, vector<8x128xf32>
    tpu.vector_store %arg7[%c0_2, %c384], %2 {strides = array<i32>} : memref<8x512xf32, #tpu.memory_space<vmem>>, vector<8x128xf32>,
    %cst_3 = arith.constant 0.000000e+00 : f32
    %4 = vector.broadcast %cst_3 : f32 to vector<4x256xf32>
    %c4 = arith.constant 4 : index
    %c128 = arith.constant 128 : index
    %5 = vector.load %arg7[%c4, %c128] : memref<8x512xf32, #tpu.memory_space<vmem>>, vector<4x256xf32>
    tpu.vector_store %arg7[%c4, %c128], %4 {strides = array<i32>} : memref<8x512xf32, #tpu.memory_space<vmem>>, vector<4x256xf32>,
    %c0_4 = arith.constant 0 : index
    %c0_5 = arith.constant 0 : index
    %6 = vector.load %arg3[%c0_4, %c0_5] : memref<16x256xf32, #tpu.memory_space<vmem>>, vector<16x256xf32>
    %c0_6 = arith.constant 0 : index
    %c0_7 = arith.constant 0 : index
    %7 = vector.load %arg2[%c0_6, %c0_7] : memref<8x72xf32, #tpu.memory_space<vmem>>, vector<8x72xf32>
    %c0_8 = arith.constant 0 : index
    %c0_9 = arith.constant 0 : index
    %8 = vector.load %arg4[%c0_8, %c0_9] : memref<8x256xf32, #tpu.memory_space<vmem>>, vector<8x256xf32>
    %c0_10 = arith.constant 0 : index
    %c0_11 = arith.constant 0 : index
    %9 = vector.load %arg5[%c0_10, %c0_11] : memref<256x64xf32, #tpu.memory_space<vmem>>, vector<256x64xf32>
    %c0_12 = arith.constant 0 : index
    %c0_13 = arith.constant 0 : index
    %c0_14 = arith.constant 0 : index
    %10 = vector.load %arg1[%c0_12, %c0_13, %c0_14] : memref<1x4x256xf32, #tpu.memory_space<vmem>>, vector<1x4x256xf32>
    %11 = vector.shape_cast %10 : vector<1x4x256xf32> to vector<4x256xf32>
    %c0_15 = arith.constant 0 : index
    %c128_16 = arith.constant 128 : index
    %12 = vector.load %arg7[%c0_15, %c128_16] : memref<8x512xf32, #tpu.memory_space<vmem>>, vector<4x256xf32>
    tpu.vector_store %arg7[%c0_15, %c128_16], %11 {strides = array<i32>} : memref<8x512xf32, #tpu.memory_space<vmem>>, vector<4x256xf32>,
    %c0_17 = arith.constant 0 : index
    %c111 = arith.constant 111 : index
    %13 = vector.load %arg7[%c0_17, %c111] : memref<8x512xf32, #tpu.memory_space<vmem>>, vector<8x256xf32>
    %14 = vector.extract_strided_slice %6 {offsets = [0, 0], sizes = [1, 256], strides = [1, 1]} : vector<16x256xf32> to vector<1x256xf32>
    %15 = vector.broadcast %14 : vector<1x256xf32> to vector<8x256xf32>
    %16 = arith.mulf %13, %15 : vector<8x256xf32>
    %c0_18 = arith.constant 0 : index
    %c0_19 = arith.constant 0 : index
    %17 = vector.load %arg8[%c0_18, %c0_19] : memref<72x256xf32, #tpu.memory_space<vmem>>, vector<8x256xf32>
    tpu.vector_store %arg8[%c0_18, %c0_19], %16 {strides = array<i32>} : memref<72x256xf32, #tpu.memory_space<vmem>>, vector<8x256xf32>,
    %c0_20 = arith.constant 0 : index
    %c112 = arith.constant 112 : index
    %18 = vector.load %arg7[%c0_20, %c112] : memref<8x512xf32, #tpu.memory_space<vmem>>, vector<8x256xf32>
    %19 = vector.extract_strided_slice %6 {offsets = [1, 0], sizes = [1, 256], strides = [1, 1]} : vector<16x256xf32> to vector<1x256xf32>
    %20 = vector.broadcast %19 : vector<1x256xf32> to vector<8x256xf32>
    %21 = arith.mulf %18, %20 : vector<8x256xf32>
    %c8 = arith.constant 8 : index
    %c0_21 = arith.constant 0 : index
    %22 = vector.load %arg8[%c8, %c0_21] : memref<72x256xf32, #tpu.memory_space<vmem>>, vector<8x256xf32>
    tpu.vector_store %arg8[%c8, %c0_21], %21 {strides = array<i32>} : memref<72x256xf32, #tpu.memory_space<vmem>>, vector<8x256xf32>,
    %c0_22 = arith.constant 0 : index
    %c113 = arith.constant 113 : index
    %23 = vector.load %arg7[%c0_22, %c113] : memref<8x512xf32, #tpu.memory_space<vmem>>, vector<8x256xf32>
    %24 = vector.extract_strided_slice %6 {offsets = [2, 0], sizes = [1, 256], strides = [1, 1]} : vector<16x256xf32> to vector<1x256xf32>
    %25 = vector.broadcast %24 : vector<1x256xf32> to vector<8x256xf32>
    %26 = arith.mulf %23, %25 : vector<8x256xf32>
    %c16 = arith.constant 16 : index
    %c0_23 = arith.constant 0 : index
    %27 = vector.load %arg8[%c16, %c0_23] : memref<72x256xf32, #tpu.memory_space<vmem>>, vector<8x256xf32>
    tpu.vector_store %arg8[%c16, %c0_23], %26 {strides = array<i32>} : memref<72x256xf32, #tpu.memory_space<vmem>>, vector<8x256xf32>,
    %c0_24 = arith.constant 0 : index
    %c127 = arith.constant 127 : index
    %28 = vector.load %arg7[%c0_24, %c127] : memref<8x512xf32, #tpu.memory_space<vmem>>, vector<8x256xf32>
    %29 = vector.extract_strided_slice %6 {offsets = [3, 0], sizes = [1, 256], strides = [1, 1]} : vector<16x256xf32> to vector<1x256xf32>
    %30 = vector.broadcast %29 : vector<1x256xf32> to vector<8x256xf32>
    %31 = arith.mulf %28, %30 : vector<8x256xf32>
    %c24 = arith.constant 24 : index
    %c0_25 = arith.constant 0 : index
    %32 = vector.load %arg8[%c24, %c0_25] : memref<72x256xf32, #tpu.memory_space<vmem>>, vector<8x256xf32>
    tpu.vector_store %arg8[%c24, %c0_25], %31 {strides = array<i32>} : memref<72x256xf32, #tpu.memory_space<vmem>>, vector<8x256xf32>,
    %c0_26 = arith.constant 0 : index
    %c128_27 = arith.constant 128 : index
    %33 = vector.load %arg7[%c0_26, %c128_27] : memref<8x512xf32, #tpu.memory_space<vmem>>, vector<8x256xf32>
    %34 = vector.extract_strided_slice %6 {offsets = [4, 0], sizes = [1, 256], strides = [1, 1]} : vector<16x256xf32> to vector<1x256xf32>
    %35 = vector.broadcast %34 : vector<1x256xf32> to vector<8x256xf32>
    %36 = arith.mulf %33, %35 : vector<8x256xf32>
    %c32 = arith.constant 32 : index
    %c0_28 = arith.constant 0 : index
    %37 = vector.load %arg8[%c32, %c0_28] : memref<72x256xf32, #tpu.memory_space<vmem>>, vector<8x256xf32>
    tpu.vector_store %arg8[%c32, %c0_28], %36 {strides = array<i32>} : memref<72x256xf32, #tpu.memory_space<vmem>>, vector<8x256xf32>,
    %c0_29 = arith.constant 0 : index
    %c129 = arith.constant 129 : index
    %38 = vector.load %arg7[%c0_29, %c129] : memref<8x512xf32, #tpu.memory_space<vmem>>, vector<8x256xf32>
    %39 = vector.extract_strided_slice %6 {offsets = [5, 0], sizes = [1, 256], strides = [1, 1]} : vector<16x256xf32> to vector<1x256xf32>
    %40 = vector.broadcast %39 : vector<1x256xf32> to vector<8x256xf32>
    %41 = arith.mulf %38, %40 : vector<8x256xf32>
    %c40 = arith.constant 40 : index
    %c0_30 = arith.constant 0 : index
    %42 = vector.load %arg8[%c40, %c0_30] : memref<72x256xf32, #tpu.memory_space<vmem>>, vector<8x256xf32>
    tpu.vector_store %arg8[%c40, %c0_30], %41 {strides = array<i32>} : memref<72x256xf32, #tpu.memory_space<vmem>>, vector<8x256xf32>,
    %c0_31 = arith.constant 0 : index
    %c143 = arith.constant 143 : index
    %43 = vector.load %arg7[%c0_31, %c143] : memref<8x512xf32, #tpu.memory_space<vmem>>, vector<8x256xf32>
    %44 = vector.extract_strided_slice %6 {offsets = [6, 0], sizes = [1, 256], strides = [1, 1]} : vector<16x256xf32> to vector<1x256xf32>
    %45 = vector.broadcast %44 : vector<1x256xf32> to vector<8x256xf32>
    %46 = arith.mulf %43, %45 : vector<8x256xf32>
    %c48 = arith.constant 48 : index
    %c0_32 = arith.constant 0 : index
    %47 = vector.load %arg8[%c48, %c0_32] : memref<72x256xf32, #tpu.memory_space<vmem>>, vector<8x256xf32>
    tpu.vector_store %arg8[%c48, %c0_32], %46 {strides = array<i32>} : memref<72x256xf32, #tpu.memory_space<vmem>>, vector<8x256xf32>,
    %c0_33 = arith.constant 0 : index
    %c144 = arith.constant 144 : index
    %48 = vector.load %arg7[%c0_33, %c144] : memref<8x512xf32, #tpu.memory_space<vmem>>, vector<8x256xf32>
    %49 = vector.extract_strided_slice %6 {offsets = [7, 0], sizes = [1, 256], strides = [1, 1]} : vector<16x256xf32> to vector<1x256xf32>
    %50 = vector.broadcast %49 : vector<1x256xf32> to vector<8x256xf32>
    %51 = arith.mulf %48, %50 : vector<8x256xf32>
    %c56 = arith.constant 56 : index
    %c0_34 = arith.constant 0 : index
    %52 = vector.load %arg8[%c56, %c0_34] : memref<72x256xf32, #tpu.memory_space<vmem>>, vector<8x256xf32>
    tpu.vector_store %arg8[%c56, %c0_34], %51 {strides = array<i32>} : memref<72x256xf32, #tpu.memory_space<vmem>>, vector<8x256xf32>,
    %c0_35 = arith.constant 0 : index
    %c145 = arith.constant 145 : index
    %53 = vector.load %arg7[%c0_35, %c145] : memref<8x512xf32, #tpu.memory_space<vmem>>, vector<8x256xf32>
    %54 = vector.extract_strided_slice %6 {offsets = [8, 0], sizes = [1, 256], strides = [1, 1]} : vector<16x256xf32> to vector<1x256xf32>
    %55 = vector.broadcast %54 : vector<1x256xf32> to vector<8x256xf32>
    %56 = arith.mulf %53, %55 : vector<8x256xf32>
    %c64 = arith.constant 64 : index
    %c0_36 = arith.constant 0 : index
    %57 = vector.load %arg8[%c64, %c0_36] : memref<72x256xf32, #tpu.memory_space<vmem>>, vector<8x256xf32>
    tpu.vector_store %arg8[%c64, %c0_36], %56 {strides = array<i32>} : memref<72x256xf32, #tpu.memory_space<vmem>>, vector<8x256xf32>,
    %c0_37 = arith.constant 0 : index
    %c0_38 = arith.constant 0 : index
    %58 = vector.load %arg8[%c0_37, %c0_38] : memref<72x256xf32, #tpu.memory_space<vmem>>, vector<72x256xf32>
    %cst_39 = arith.constant dense<0.000000e+00> : vector<8x256xf32>
    %59 = tpu.matmul %7, %58, %cst_39 {dimension_numbers = #tpu.dot_dimension_numbers<[1], [0], [0], [1], [0, 0, 1, 1], [], []>} : vector<8x72xf32>, vector<72x256xf32>, vector<8x256xf32> -> vector<8x256xf32>
    %60 = arith.addf %59, %8 : vector<8x256xf32>
    %cst_40 = arith.constant 0.000000e+00 : f32
    %61 = vector.broadcast %cst_40 : f32 to vector<8x256xf32>
    %62 = arith.maximumf %60, %61 : vector<8x256xf32>
    %cst_41 = arith.constant dense<0.000000e+00> : vector<8x64xf32>
    %63 = tpu.matmul %62, %9, %cst_41 {dimension_numbers = #tpu.dot_dimension_numbers<[1], [0], [0], [1], [0, 0, 1, 1], [], []>} : vector<8x256xf32>, vector<256x64xf32>, vector<8x64xf32> -> vector<8x64xf32>
    %64 = vector.shape_cast %63 : vector<8x64xf32> to vector<1x8x64xf32>
    %c0_42 = arith.constant 0 : index
    %c0_43 = arith.constant 0 : index
    %c0_44 = arith.constant 0 : index
    %65 = vector.load %arg6[%c0_42, %c0_43, %c0_44] : memref<1x8x64xf32, #tpu.memory_space<vmem>>, vector<1x8x64xf32>
    tpu.vector_store %arg6[%c0_42, %c0_43, %c0_44], %64 {strides = array<i32>} : memref<1x8x64xf32, #tpu.memory_space<vmem>>, vector<1x8x64xf32>,
    return
  }
  func.func @transform_0(%arg0: i32) -> (i32, i32, i32) {
    %c0_i32 = arith.constant 0 : i32
    %c0_i32_0 = arith.constant 0 : i32
    %c0_i32_1 = arith.constant 0 : i32
    return %arg0, %c0_i32, %c0_i32_0 : i32, i32, i32
  }
  func.func @transform_1(%arg0: i32) -> (i32, i32) {
    %c0_i32 = arith.constant 0 : i32
    %c0_i32_0 = arith.constant 0 : i32
    %c0_i32_1 = arith.constant 0 : i32
    return %c0_i32, %c0_i32_0 : i32, i32
  }
  func.func @transform_2(%arg0: i32) -> (i32, i32) {
    %c0_i32 = arith.constant 0 : i32
    %c0_i32_0 = arith.constant 0 : i32
    %c0_i32_1 = arith.constant 0 : i32
    return %c0_i32, %c0_i32_0 : i32, i32
  }
  func.func @transform_3(%arg0: i32) -> (i32, i32) {
    %c0_i32 = arith.constant 0 : i32
    %c0_i32_0 = arith.constant 0 : i32
    %c0_i32_1 = arith.constant 0 : i32
    return %c0_i32, %c0_i32_0 : i32, i32
  }
  func.func @transform_4(%arg0: i32) -> (i32, i32) {
    %c0_i32 = arith.constant 0 : i32
    %c0_i32_0 = arith.constant 0 : i32
    %c0_i32_1 = arith.constant 0 : i32
    return %c0_i32, %c0_i32_0 : i32, i32
  }
  func.func @transform_5(%arg0: i32) -> (i32, i32, i32) {
    %c0_i32 = arith.constant 0 : i32
    %c0_i32_0 = arith.constant 0 : i32
    %c0_i32_1 = arith.constant 0 : i32
    return %arg0, %c0_i32, %c0_i32_0 : i32, i32, i32
  }
}

</mosaic_0001>

<bundles_post_ra>
// kernel: tpu_custom_call.1
= control target key start
LH: loop header
LB: loop body
LE: loop exit
PB: predicated region body
PF: predicated region fallthrough
CT: control target
= control target key end

     0   :  { %10 = vsyncpa [#allocation5], 0  ;;  %s1365_s0 = inlined_call_operand.vmem [shape: f32[2,4,256], index: 0, kind: input, shape index: {}]   ;;  %s1366_s1 = inlined_call_operand.vmem [shape: f32[8,72], index: 1, kind: input, shape index: {}]   ;;  %s1367_s2 = inlined_call_operand.vmem [shape: f32[16,256], index: 2, kind: input, shape index: {}]   ;;  %s1368_s3 = inlined_call_operand.vmem [shape: f32[8,256], index: 3, kind: input, shape index: {}]   ;;  %s1369_s4 = inlined_call_operand.vmem [shape: f32[256,64], index: 4, kind: input, shape index: {}]   ;;  %s1370_s5 = inlined_call_operand.hbm [shape: f32[2,8,64], index: 5, kind: output, shape index: {}]  }
   0x1   :  { %12 = vsyncpa [#allocation5 + $0x1], 0  ;;  %s1045_s18 = smov 0   ;;  %s1047_s19 = smov 0  }
   0x2   :  { %s1049_s20 = smov 0   ;;  %s1051_s21 = smov 0  }
   0x3 LB: > { %s1066_s22 = sadd.s32 4294967295, %s1003_s21   ;;  %s846_s23 = sadd.s32 4294967294, %s1003_s21   ;;  %s1003_s21 = sphi %s1051_s21, %s1376_s21   ;;  %s999_s20 = sphi %s1049_s20, %s1375_s20   ;;  %s995_s19 = sphi %s1047_s19, %s1374_s19   ;;  %s991_s18 = sphi %s1045_s18, %s1373_s18  }
   0x4   : > { %s1070_s24 = sadd.s32 1, %s1003_s21   ;;  %s135_s25 = sadd.s32 1, %s999_s20 }
   0x5   : > { %s132_s26 = ssub.s32 %s1003_s21, %s1070_s24  ;;  %p145_p0 = scmp.ne.s32.totalorder %s999_s20, %s995_s19 }
   0x6   : > { %p133_p1 = scmp.eq.s32.totalorder %s132_s26, 0  ;;  %p146_p2 = scmp.eq.s32.totalorder %s1066_s22, 1 }
   0x7   : > { %p151_p3 = scmp.ne.s32.totalorder %s995_s19, %s991_s18  ;;  %p152_p4 = scmp.eq.s32.totalorder %s846_s23, 1 }
   0x8   : > { %s1081_s27 = scalar_select %p133_p1, %s999_s20, %s135_s25  }
   0x9   : > { %p1083_p5 = por %p146_p2, %p145_p0  ;;  %p1087_p6 = por %p152_p4, %p151_p3 }
   0xa   : > { %p849_p7 = scmp.ge.s32.totalorder %s1003_s21, 1  ;;  %p190_p8 = scmp.lt.s32.totalorder %s1003_s21, 3 }
   0xc   : > { %p191_p9 = pnand %p849_p7, %p190_p8 }
   0xd   : > { %p218_p10 = scmp.lt.s32.totalorder (!%p191_p9), %s1066_s22, 1  ;;  %s1006_s14 = smov (!%p191_p9), 17  }
   0xe   : > { %194 = sbr.rel (%p191_p9) target bundleno = 719 (0x2cf), region = 40  ;;  %s1007_s15 = smov (!%p191_p9), 16  }
   0xf   : > { %s1008_s26 = smov (!%p191_p9), 15   ;;  %s1009_s30 = smov (!%p191_p9), 1  }
  0x10   : > { %s1010_s6 = smov (!%p191_p9), 127   ;;  %s1011_s7 = smov (!%p191_p9), 113  }
  0x11   : > { %s1012_s8 = smov (!%p191_p9), 112   ;;  %s1013_s9 = smov (!%p191_p9), 111  }
  0x12   : > { %s1014_s11 = smov (!%p191_p9), [#allocation4]  }
  0x13   : > { %v275_v0 = vlaneseq  ;;  %v1005_v1 = vmov 0.0   ;;  %v229_v3 = vld [vmem:[%s1367_s2 + $0x10] sm:$0xff]  ;;  %v1101_v4 = vld [vmem:[%s1367_s2] sm:$0xff]  ;;  %v230_v7 = vld [vmem:[%s1367_s2 + $0x18] sm:$0xff]  ;;  %s219_s13 = scalar_select %p218_p10, %s1066_s22, 1  ;;  %vm306_vm0 = vcmask 138240  }
  0x14   : > { %225 = vst [vmem:[#allocation2 + $0x10] sm:$0xf0] %v1005_v1  ;;  %226 = vst [vmem:[#allocation2 + $0x18] sm:$0xf0] %v1005_v1  ;;  %692 = vmatprep.mubr.f32.mxu0 %v1005_v1  ;;  %v1112_v8 = vld [vmem:[%s1367_s2 + $0x8] sm:$0xff]  ;;  %vm347_vm1 = vcmask 130048  }
  0x15   : > { %v1093_v2 = vshrl.u32 %v275_v0, 7  ;;  %s858_s16 = sshll.u32 %s219_s13, 3  ;;  %vm388_vm2 = vcmask 121856   ;;  %vm429_vm3 = vcmask 7168   ;;  %vm412_vm4 = vcmask 1039360   ;;  %s947_s12 = sshll.u32 %s1014_s11, 4  ;;  %s948_s12 = int_to_ptr.vmem [resolvable:$false] %s947_s12 }
  0x16   : > { %s222_s25 = scalar_lea.vmem %s1365_s0, %s858_s16  ;;  %vm371_vm5 = vcmask 924672   ;;  %vm330_vm6 = vcmask 916480   ;;  %vm289_vm7 = vcmask 908288   ;;  %vm624_vm8 = vcmask 588800  }
  0x17   : > { %v277_v5 = vsub.s32 0, %v1093_v2  ;;  %v533_v6 = vsub.s32 7, %v1093_v2  ;;  %v494_v13 = vsub.s32 6, %v1093_v2  ;;  %v266_v14 = vld [vmem:[%s222_s25] sm:$0xff]  ;;  %v455_v18 = vsub.s32 5, %v1093_v2  ;;  %s215_s25 = sand.u32 1, %s995_s19  }
  0x18   : > { %270 = vst [vmem:[#allocation2 + $0x10] sm:$0xf] %v266_v14  ;;  %v268_v15 = vcombine.high %v266_v14, %v266_v14  ;;  %v400_v21 = vsub.s32 3, %v1093_v2  ;;  %v359_v24 = vsub.s32 2, %v1093_v2  ;;  %v318_v27 = vsub.s32 1, %v1093_v2 }
  0x19   : > { %v573_v9 = vrot.slane %v229_v3, %v277_v5  ;;  %v534_v10 = vrot.slane %v1101_v4, %v533_v6  ;;  %v577_v11 = vrot.slane %v230_v7, %v277_v5  ;;  %v538_v12 = vrot.slane %v1112_v8, %v533_v6 }
  0x1a   : > { %v499_v16 = vrot.slane %v1112_v8, %v494_v13  ;;  %v495_v17 = vrot.slane %v1101_v4, %v494_v13  ;;  %271 = vst [vmem:[#allocation2 + $0x18] sm:$0xf] %v268_v15  ;;  %v460_v19 = vrot.slane %v1112_v8, %v455_v18  ;;  %v456_v20 = vrot.slane %v1101_v4, %v455_v18 }
  0x1b   : > { %580 = vrot.lane.b32.xlu0 %v573_v9, %s1006_s14  ;;  %541 = vrot.lane.b32.xlu1 %v534_v10, %s1007_s15  ;;  %v405_v22 = vrot.slane %v1112_v8, %v400_v21  ;;  %v401_v23 = vrot.slane %v1101_v4, %v400_v21  ;;  %v364_v25 = vrot.slane %v1112_v8, %v359_v24  ;;  %v248_v21 = vld [vmem:[%s1369_s4 + $0x70] sm:$0xff]  ;;  %vm771_vm9 = vcmask 523264  }
  0x1c   : > { %v360_v26 = vrot.slane %v1101_v4, %v359_v24  ;;  %v319_v28 = vrot.slane %v1101_v4, %v318_v27  ;;  %v323_v29 = vrot.slane %v1112_v8, %v318_v27  ;;  %v282_v30 = vrot.slane %v1112_v8, %v277_v5  ;;  %v263_v24 = vld [vmem:[%s1369_s4 + $0xe8] sm:$0xff]  ;;  %v246_v27 = vld [vmem:[%s1369_s4 + $0x60] sm:$0xff] }
  0x1d   : > { %v278_v31 = vrot.slane %v1101_v4, %v277_v5 }
  0x1f   : > { %582 = vrot.lane.b32.xlu0 %v577_v11, %s1006_s14  ;;  %543 = vrot.lane.b32.xlu1 %v538_v12, %s1007_s15  ;;  %v1153_v32 = vld [vmem:[#allocation2 + $0x10] sm:$0xff] }
  0x21   : > { %v1166_v52 = vld [vmem:[#allocation2 + $0x18] sm:$0xff] }
  0x23   : > { %504 = vrot.lane.b32.xlu1 %v499_v16, %s1008_s26  ;;  %502 = vrot.lane.b32.xlu0 %v495_v17, %s1008_s26  ;;  %v265_v16 = vld [vmem:[%s1369_s4 + $0xf8] sm:$0xff] }
  0x24   : > { %v249_v17 = vld [vmem:[%s1369_s4 + $0x78] sm:$0xff]  ;;  %859 = vmatprep.subr.mxu1 %v265_v16 }
  0x25   : > { %860 = vmatpush3.msra.mxu1 %v249_v17 }
  0x27   : > { %465 = vrot.lane.b32.xlu1 %v460_v19, %s1009_s30  ;;  %463 = vrot.lane.b32.xlu0 %v456_v20, %s1009_s30  ;;  %v264_v20 = vld [vmem:[%s1369_s4 + $0xf0] sm:$0xff] }
  0x28   : > { %861 = vmatprep.subr.mxu1 %v264_v20 }
  0x29   : > { %862 = vmatpush3.msra.mxu1 %v248_v21 }
  0x2a   : > { %863 = vmatprep.subr.mxu1 %v263_v24 }
  0x2b   : > { %410 = vrot.lane.b32.xlu1 %v405_v22, %s1010_s6  ;;  %408 = vrot.lane.b32.xlu0 %v401_v23, %s1010_s6 }
  0x2f   : > { %369 = vrot.lane.b32.xlu1 %v364_v25, %s1011_s7  ;;  %367 = vrot.lane.b32.xlu0 %v360_v26, %s1011_s7  ;;  %v247_v25 = vld [vmem:[%s1369_s4 + $0x68] sm:$0xff]  ;;  %v262_v26 = vld [vmem:[%s1369_s4 + $0xe0] sm:$0xff] }
  0x30   : > { %864 = vmatpush3.msra.mxu1 %v247_v25  ;;  %v231_v25 = vld [vmem:[%s1366_s1] sm:$0xff] }
  0x31   : > { %865 = vmatprep.subr.mxu1 %v262_v26 }
  0x32   : > { %866 = vmatpush3.msra.mxu1 %v246_v27  ;;  %v253_v27 = vld [vmem:[%s1369_s4 + $0x98] sm:$0xff] }
  0x33   : > { %326 = vrot.lane.b32.xlu0 %v319_v28, %s1012_s8  ;;  %328 = vrot.lane.b32.xlu1 %v323_v29, %s1012_s8  ;;  %v261_v28 = vld [vmem:[%s1369_s4 + $0xd8] sm:$0xff] }
  0x34   : > { %867 = vmatprep.subr.mxu1 %v261_v28  ;;  %v237_v28 = vld [vmem:[%s1369_s4 + $0x18] sm:$0xff] }
  0x37   : > { %287 = vrot.lane.b32.xlu1 %v282_v30, %s1013_s9  ;;  %285 = vrot.lane.b32.xlu0 %v278_v31, %s1013_s9  ;;  %v245_v30 = vld [vmem:[%s1369_s4 + $0x58] sm:$0xff]  ;;  %v260_v31 = vld [vmem:[%s1369_s4 + $0xd0] sm:$0xff] }
  0x38   : > { %868 = vmatpush3.msra.mxu1 %v245_v30  ;;  %v236_v30 = vld [vmem:[%s1369_s4 + $0x10] sm:$0xff] }
  0x39   : > { %869 = vmatprep.subr.mxu1 %v260_v31  ;;  %v251_v31 = vld [vmem:[%s1369_s4 + $0x88] sm:$0xff] }
  0x8d   : > { %v581_v33 = vpop.permute.xlu0 %580  ;;  %v542_v34 = vpop.permute.xlu1 %541 }
  0x8e   : > { %v588_v35 = vmul.f32 %v581_v33, %v1153_v32  ;;  %v549_v42 = vmul.f32 %v1153_v32, %v542_v34 }
  0x90   : > { %594 = vrot.lane.b32.xlu0 %v588_v35, %s1013_s9  ;;  %v243_v35 = vld [vmem:[%s1369_s4 + $0x48] sm:$0xff] }
  0x91   : > { %v583_v36 = vpop.permute.xlu0 %582  ;;  %v544_v37 = vpop.permute.xlu1 %543 }
  0x92   : > { %v590_v38 = vmul.f32 0.0, %v583_v36  ;;  %v551_v39 = vmul.f32 0.0, %v544_v37  ;;  %v584_v61 = vsel %vm306_vm0, %v581_v33, %v583_v36  ;;  %v545_v0 = vsel %vm347_vm1, %v542_v34, %v544_v37  ;;  %v244_v33 = vld [vmem:[%s1369_s4 + $0x50] sm:$0xff]  ;;  %v259_v34 = vld [vmem:[%s1369_s4 + $0xc8] sm:$0xff]  ;;  %v258_v36 = vld [vmem:[%s1369_s4 + $0xc0] sm:$0xff] }
  0x93   : > { %v589_v63 = vmul.f32 %v584_v61, %v1166_v52  ;;  %v550_v3 = vmul.f32 %v1166_v52, %v545_v0  ;;  %870 = vmatpush3.msra.mxu1 %v244_v33  ;;  %v242_v37 = vld [vmem:[%s1369_s4 + $0x40] sm:$0xff]  ;;  %v235_v33 = vld [vmem:[%s1369_s4 + $0x8] sm:$0xff] }
  0x94   : > { %598 = vrot.lane.b32.xlu1 %v590_v38, %s1013_s9  ;;  %559 = vrot.lane.b32.xlu0 %v551_v39, %s1012_s8  ;;  %v257_v38 = vld [vmem:[%s1369_s4 + $0xb8] sm:$0xff] }
  0x95   : > { %v505_v40 = vpop.permute.xlu1 %504  ;;  %v503_v41 = vpop.permute.xlu0 %502  ;;  %871 = vmatprep.subr.mxu1 %v259_v34  ;;  %v241_v39 = vld [vmem:[%s1369_s4 + $0x38] sm:$0xff]  ;;  %v250_v34 = vld [vmem:[%s1369_s4 + $0x80] sm:$0xff] }
  0x96   : > { %v510_v43 = vmul.f32 %v1153_v32, %v503_v41  ;;  %v512_v44 = vmul.f32 0.0, %v505_v40  ;;  %v506_v1 = vsel %vm388_vm2, %v503_v41, %v505_v40  ;;  %872 = vmatpush3.msra.mxu1 %v243_v35  ;;  %v256_v40 = vld [vmem:[%s1369_s4 + $0xb0] sm:$0xff]  ;;  %v234_v35 = vld [vmem:[%s1369_s4] sm:$0xff] }
  0x97   : > { %v511_v5 = vmul.f32 %v1166_v52, %v506_v1  ;;  %873 = vmatprep.subr.mxu1 %v258_v36  ;;  %v240_v41 = vld [vmem:[%s1369_s4 + $0x30] sm:$0xff]  ;;  %v232_v36 = vld [vmem:[%s1368_s3] sm:$0xff] }
  0x98   : > { %555 = vrot.lane.b32.xlu1 %v549_v42, %s1012_s8  ;;  %516 = vrot.lane.b32.xlu0 %v510_v43, %s1011_s7  ;;  %v255_v42 = vld [vmem:[%s1369_s4 + $0xa8] sm:$0xff] }
  0x99   : > { %v466_v45 = vpop.permute.xlu1 %465  ;;  %v464_v46 = vpop.permute.xlu0 %463  ;;  %874 = vmatpush3.msra.mxu1 %v242_v37  ;;  %v239_v43 = vld [vmem:[%s1369_s4 + $0x28] sm:$0xff] }
  0x9a   : > { %v473_v47 = vmul.f32 0.0, %v466_v45  ;;  %v471_v48 = vmul.f32 %v1153_v32, %v464_v46  ;;  %v467_v6 = vsel %vm429_vm3, %v464_v46, %v466_v45  ;;  %875 = vmatprep.subr.mxu1 %v257_v38  ;;  %v238_v45 = vld [vmem:[%s1369_s4 + $0x20] sm:$0xff]  ;;  %v233_v38 = vld [vmem:[%s1368_s3 + $0x8] sm:$0xff] }
  0x9b   : > { %v472_v9 = vmul.f32 %v1166_v52, %v467_v6  ;;  %876 = vmatpush3.msra.mxu1 %v241_v39 }
  0x9c   : > { %520 = vrot.lane.b32.xlu1 %v512_v44, %s1011_s7  ;;  %481 = vrot.lane.b32.xlu0 %v473_v47, %s1010_s6  ;;  %v254_v44 = vld [vmem:[%s1369_s4 + $0xa0] sm:$0xff] }
  0x9d   : > { %v411_v49 = vpop.permute.xlu1 %410  ;;  %v409_v50 = vpop.permute.xlu0 %408  ;;  %877 = vmatprep.subr.mxu1 %v256_v40 }
  0x9e   : > { %v417_v51 = vmul.f32 0.0, %v409_v50  ;;  %v419_v53 = vmul.f32 %v1166_v52, %v411_v49  ;;  %v413_v7 = vsel %vm412_vm4, %v409_v50, %v411_v49  ;;  %878 = vmatpush3.msra.mxu1 %v240_v41 }
  0x9f   : > { %v418_v10 = vmul.f32 %v1153_v32, %v413_v7  ;;  %879 = vmatprep.subr.mxu1 %v255_v42 }
  0xa0   : > { %423 = vrot.lane.b32.xlu0 %v417_v51, %s1009_s30  ;;  %477 = vrot.lane.b32.xlu1 %v471_v48, %s1010_s6 }
  0xa1   : > { %v370_v54 = vpop.permute.xlu1 %369  ;;  %v368_v55 = vpop.permute.xlu0 %367  ;;  %880 = vmatpush3.msra.mxu1 %v239_v43 }
  0xa2   : > { %v378_v56 = vmul.f32 %v1166_v52, %v370_v54  ;;  %v376_v57 = vmul.f32 0.0, %v368_v55  ;;  %v372_v13 = vsel %vm371_vm5, %v368_v55, %v370_v54  ;;  %881 = vmatprep.subr.mxu1 %v254_v44 }
  0xa3   : > { %v377_v18 = vmul.f32 %v1153_v32, %v372_v13  ;;  %882 = vmatpush3.msra.mxu1 %v238_v45 }
  0xa4   : > { %427 = vrot.lane.b32.xlu1 %v419_v53, %s1009_s30  ;;  %386 = vrot.lane.b32.xlu0 %v378_v56, %s1008_s26 }
  0xa5   : > { %v327_v58 = vpop.permute.xlu0 %326  ;;  %v329_v59 = vpop.permute.xlu1 %328  ;;  %883 = vmatprep.subr.mxu1 %v253_v27 }
  0xa6   : > { %v335_v60 = vmul.f32 0.0, %v327_v58  ;;  %v337_v62 = vmul.f32 %v1166_v52, %v329_v59  ;;  %v331_v14 = vsel %vm330_vm6, %v327_v58, %v329_v59  ;;  %884 = vmatpush3.msra.mxu1 %v237_v28 }
  0xa7   : > { %v336_v19 = vmul.f32 %v1153_v32, %v331_v14 }
  0xa8   : > { %382 = vrot.lane.b32.xlu1 %v376_v57, %s1008_s26  ;;  %341 = vrot.lane.b32.xlu0 %v335_v60, %s1007_s15 }
  0xa9   : > { %v288_v11 = vpop.permute.xlu1 %287  ;;  %v286_v12 = vpop.permute.xlu0 %285 }
  0xaa   : > { %v290_v15 = vsel %vm289_vm7, %v286_v12, %v288_v11  ;;  %v296_v22 = vmul.f32 %v1166_v52, %v288_v11  ;;  %v294_v29 = vmul.f32 0.0, %v286_v12 }
  0xab   : > { %v295_v23 = vmul.f32 %v1153_v32, %v290_v15 }
  0xac   : > { %596 = vrot.lane.b32.xlu0 %v589_v63, %s1013_s9  ;;  %345 = vrot.lane.b32.xlu1 %v337_v62, %s1007_s15  ;;  %v440_v62 = vsub.s32 4, %v1093_v2 }
  0xb0   : > { %518 = vrot.lane.b32.xlu0 %v511_v5, %s1011_s7  ;;  %557 = vrot.lane.b32.xlu1 %v550_v3, %s1012_s8  ;;  %v445_v5 = vrot.slane %v1112_v8, %v440_v62 }
  0xb2   : > { %v447_v13 = vmul.f32 %v1166_v52, %v445_v5 }
  0xb4   : > { %425 = vrot.lane.b32.xlu0 %v418_v10, %s1009_s30  ;;  %479 = vrot.lane.b32.xlu1 %v472_v9, %s1010_s6  ;;  %v441_v9 = vrot.slane %v1101_v4, %v440_v62  ;;  %s850_s30 = sshll.u32 %s215_s25, 3  ;;  %s855_s6 = sshll.u32 %s1066_s22, 7 }
  0xb5   : > { %s217_s7 = scalar_lea.vmem [#allocation4], %s850_s30  ;;  %s949_s22 = scalar_lea.vmem %s948_s12, 256 }
  0xb6   : > { %v446_v15 = vmul.f32 %v1153_v32, %v441_v9  ;;  %s787_s8 = sshll.u32 %s217_s7, 4  ;;  %s788_s8 = int_to_ptr.vmem [resolvable:$true] %s787_s8 }
  0xb7   : > { %p950_p0 = scmp.lt.s32.totalorder %s788_s8, %s948_s12 }
  0xb8   : > { %343 = vrot.lane.b32.xlu0 %v336_v19, %s1007_s15  ;;  %384 = vrot.lane.b32.xlu1 %v377_v18, %s1008_s26  ;;  %s785_s15 = scalar_lea.hbm %s1370_s5, %s855_s6  ;;  %s943_s26 = scalar_lea.vmem %s788_s8, 128 }
  0xb9   : > { %p944_p11 = scmp.ne.s32.totalorder %s788_s8, %s943_s26  ;;  %p951_p1 = scmp.lt.s32.totalorder %s949_s22, %s943_s26 }
  0xbb   : > { %p945_p12 = pnand %p944_p11, %p1083_p5  ;;  %p952_p2 = por %p951_p1, %p950_p0 }
  0xbc   : > { %302 = vrot.lane.b32.xlu1 %v295_v23, %s1006_s14  ;;  %304 = vrot.lane.b32.xlu0 %v296_v22, %s1006_s14 }
  0xbd   : > { %p946_p13 = pneg %p945_p12 }
  0xbf   : > { %p953_p3 = pnand %p952_p2, %p946_p13 }
  0xc0   : > { %300 = vrot.lane.b32.xlu1 %v294_v29, %s1006_s14  ;;  %v252_v29 = vld [vmem:[%s1369_s4 + $0x90] sm:$0xff]  ;;  %s774_s14 = scalar_lea.sflag [#allocation5], %s215_s25 }
  0xc1   : > { %885 = vmatprep.subr.mxu1 %v252_v29 }
  0xc2   : > { %886 = vmatpush3.msra.mxu1 %v236_v30 }
  0xc3   : > { %887 = vmatprep.subr.mxu1 %v251_v31 }
  0xc4   : > { %888 = vmatpush3.msra.mxu1 %v235_v33 }
  0xc5   : > { %889 = vmatprep.subr.mxu1 %v250_v34 }
  0xc6   : > { %890 = vmatpush3.msra.mxu1 %v234_v35 }
 0x102   : > { %v595_v46 = vpop.permute.xlu0 %594 }
 0x106   : > { %v599_v47 = vpop.permute.xlu1 %598  ;;  %v560_v48 = vpop.permute.xlu0 %559 }
 0x10a   : > { %v556_v49 = vpop.permute.xlu1 %555  ;;  %v517_v50 = vpop.permute.xlu0 %516 }
 0x10e   : > { %v521_v51 = vpop.permute.xlu1 %520  ;;  %v482_v53 = vpop.permute.xlu0 %481 }
 0x112   : > { %v424_v54 = vpop.permute.xlu0 %423  ;;  %v478_v55 = vpop.permute.xlu1 %477 }
 0x116   : > { %v428_v56 = vpop.permute.xlu1 %427  ;;  %v387_v57 = vpop.permute.xlu0 %386 }
 0x11a   : > { %v383_v58 = vpop.permute.xlu1 %382  ;;  %v342_v59 = vpop.permute.xlu0 %341 }
 0x11e   : > { %v597_v60 = vpop.permute.xlu0 %596  ;;  %v346_v61 = vpop.permute.xlu1 %345 }
 0x11f   : > { %v601_v63 = vsel %vm289_vm7, %v597_v60, %v599_v47  ;;  %v600_v0 = vsel %vm289_vm7, %v595_v46, %v597_v60 }
 0x120   : > { %642 = vmatprep.subr.mxu0 %v601_v63 }
 0x121   : > { %643 = vmatpush1.msra.mxu0 %v600_v0 }
 0x122   : > { %v519_v1 = vpop.permute.xlu0 %518  ;;  %v558_v3 = vpop.permute.xlu1 %557 }
 0x123   : > { %v562_v6 = vsel %vm330_vm6, %v558_v3, %v560_v48  ;;  %v561_v7 = vsel %vm330_vm6, %v556_v49, %v558_v3  ;;  %v523_v2 = vsel %vm371_vm5, %v519_v1, %v521_v51  ;;  %v522_v12 = vsel %vm371_vm5, %v517_v50, %v519_v1 }
 0x124   : > { %644 = vmatprep.subr.mxu0 %v562_v6 }
 0x125   : > { %645 = vmatpush1.msra.mxu0 %v561_v7 }
 0x126   : > { %v426_v10 = vpop.permute.xlu0 %425  ;;  %646 = vmatprep.subr.mxu0 %v523_v2  ;;  %v480_v11 = vpop.permute.xlu1 %479 }
 0x127   : > { %647 = vmatpush1.msra.mxu0 %v522_v12  ;;  %v484_v8 = vsel %vm412_vm4, %v480_v11, %v482_v53  ;;  %v483_v14 = vsel %vm412_vm4, %v478_v55, %v480_v11  ;;  %v431_v17 = vsel %vm429_vm3, %v426_v10, %v428_v56  ;;  %v430_v18 = vsel %vm429_vm3, %v424_v54, %v426_v10 }
 0x128   : > { %648 = vmatprep.subr.mxu0 %v484_v8 }
 0x129   : > { %649 = vmatpush1.msra.mxu0 %v483_v14 }
 0x12a   : > { %v344_v4 = vpop.permute.xlu0 %343  ;;  %650 = vmatprep.subr.mxu0 %v447_v13  ;;  %v385_v16 = vpop.permute.xlu1 %384 }
 0x12b   : > { %651 = vmatpush1.msra.mxu0 %v446_v15  ;;  %v390_v52 = vsel %vm388_vm2, %v385_v16, %v387_v57  ;;  %v389_v21 = vsel %vm388_vm2, %v383_v58, %v385_v16  ;;  %v349_v32 = vsel %vm347_vm1, %v344_v4, %v346_v61  ;;  %v348_v22 = vsel %vm347_vm1, %v342_v59, %v344_v4 }
 0x12c   : > { %652 = vmatprep.subr.mxu0 %v431_v17 }
 0x12d   : > { %653 = vmatpush1.msra.mxu0 %v430_v18 }
 0x12e   : > { %654 = vmatprep.subr.mxu0 %v390_v52  ;;  %v303_v19 = vpop.permute.xlu1 %302  ;;  %v305_v20 = vpop.permute.xlu0 %304 }
 0x12f   : > { %655 = vmatpush1.msra.mxu0 %v389_v21  ;;  %v308_v23 = vsel %vm306_vm0, %v303_v19, %v305_v20 }
 0x130   : > { %656 = vmatprep.subr.mxu0 %v349_v32 }
 0x131   : > { %657 = vmatpush1.msra.mxu0 %v348_v22 }
 0x132   : > { %v301_v24 = vpop.permute.xlu1 %300  ;;  %658 = vmatprep.subr.mxu0 %v308_v23 }
 0x133   : > { %v307_v26 = vsel %vm306_vm0, %v301_v24, %v303_v19 }
 0x134   : > { %659 = vmatpush1.msra.mxu0 %v307_v26 }
 0x135   : > { %853 = vmatmul.mubr.msk.f32.vlgmr.msra.gmra.mxu0 %vm624_vm8, %v231_v25 }
 0x1f5   : > { %v694_v37 = vpop.f32.mrf.mxu0 }
 0x1f6   : > { %v695_v39 = vadd.f32 %v694_v37, %v232_v36 }
 0x1f7   : > { %v696_v40 = vpop.f32.mrf.mxu0 }
 0x1f8   : > { %v697_v41 = vadd.f32 %v696_v40, %v233_v38  ;;  %v699_v43 = vmax.f32 %v695_v39, 0.0 }
 0x1fa   : > { %v700_v42 = vmax.f32 %v697_v41, 0.0 }
 0x1fc   : > { %765 = vmatprep.mubr.f32.mxu1 %v700_v42 }
 0x1fd   : > { %766 = vmatmul.mubr.f32.vlgmr.msra.gmra.mxu1 %v699_v43 }
 0x2bd   : > { %v891_v44 = vpop.f32.mrf.mxu1 }
 0x2bf   : > { %v892_v45 = vpop.f32.mrf.mxu1 }
 0x2c0   : > { %v893_v46 = vadd.f32 %v892_v45, %v891_v44 }
 0x2c2   : > { %772 = vst.msk [vmem:[%s217_s7] sm:$0xff] %vm771_vm9, %v893_v46 }
 0x2c3   : > { %956 = shalt.err (!%p953_p3)
}
 0x2c4   : > { %s957_s13 = scalar_lea.hbm %s785_s15, 128  ;;  %s961_s23 = scalar_lea.hbm %s1370_s5, 256 }
 0x2c5   : > { %p958_p4 = scmp.ne.s32.totalorder %s785_s15, %s957_s13  ;;  %p962_p9 = scmp.lt.s32.totalorder %s785_s15, %s1370_s5 }
 0x2c6   : > { %p963_p10 = scmp.lt.s32.totalorder %s961_s23, %s957_s13 }
 0x2c7   : > { %p959_p7 = pnand %p958_p4, %p1083_p5 }
 0x2c8   : > { %p964_p11 = por %p963_p10, %p962_p9 }
 0x2c9   : > { %p960_p8 = pneg %p959_p7 }
 0x2cb   : > { %p965_p12 = pnand %p964_p11, %p960_p8 }
 0x2cd   : > { %968 = shalt.err (!%p965_p12)
}
 0x2ce   : > { %894 = dma.vmem_to_hbm [thread:$0]  (%p1083_p5), %s788_s8, 128, %s785_s15, %s774_s14  }
 0x2cf PF: > { %p900_p13 = scmp.ge.s32.totalorder %s1003_s21, 2  ;;  %s799_s6 = sand.u32 1, %s991_s18  }
 0x2d0   : > { %s800_s7 = scalar_lea.sflag [#allocation5], %s799_s6 }
 0x2d1   : > { %p897_p0 = pnand %p900_p13, %p1087_p6 }
 0x2d3   : > { %p898_p1 = pneg %p897_p0 }
 0x2d5   : > { %986 = dma.done.wait (%p898_p1), %s800_s7, 128  }
 0x2d6   : > { %988 = vsyncadd (%p898_p1), %s800_s7, 4294967168  ;;  %p15_p2 = scmp.ge.s32.totalorder %s1070_s24, 4   ;;  %s1373_s18 = smov %s995_s19 }
 0x2d7   : > { %s1374_s19 = smov %s999_s20  ;;  %s1375_s20 = smov %s1081_s27 }
 0x2d8   : > { %s1376_s21 = smov %s1070_s24  ;;  %17 = sbr.rel (!%p15_p2) target bundleno = 3 (0x3), region = 75 }
 0x2dd   :  { %805 = vsyncpa [#allocation5], 1 }
 0x2de   :  { %807 = vsyncpa [#allocation5 + $0x1], 1 }

</bundles_post_ra>
